<compile_context>
chip_gen: v7x
topology: tpu7x:2x2x1
jax: 0.10.0
libtpu: 0.0.40
codegen_flags: <defaults>
</compile_context>

<pallas_src>
import jax
import jax.numpy as jnp
from jax.experimental import pallas as pl
from jax.experimental.pallas import tpu as pltpu


def _round_up(x, m):
    return (x + m - 1) // m * m


def _leaky_relu(x, slope=0.2):
    return jnp.where(x > 0, x, slope * x)


def discriminator_kernel(x_ref, w1_ref, b1_ref, w2_ref, b2_ref, w3_ref, b3_ref,
                         o_ref):
    # x_ref: (TB, F) f32 tile; w1/w2: bf16 (in, out); b1/b2/w3/b3: f32 rows.
    x = x_ref[...].astype(jnp.bfloat16)                  # cast in VMEM (VPU)
    h1 = jnp.dot(x, w1_ref[...], preferred_element_type=jnp.float32)
    h1 = _leaky_relu(h1 + b1_ref[...])                   # (TB, 512) f32
    h2 = jnp.dot(h1.astype(jnp.bfloat16), w2_ref[...],
                 preferred_element_type=jnp.float32)
    h2 = _leaky_relu(h2 + b2_ref[...])                   # (TB, 256) f32
    # Final 256 -> 1 layer: lane reduction instead of an N=1 MXU matmul,
    # stored lane-dense as a single (1, TB) row.
    out = jnp.sum(h2 * w3_ref[...], axis=-1)             # (TB,)
    o_ref[...] = (out[None, :] + b3_ref[...]).astype(o_ref.dtype)


def prepare_params(params):
    """One-time weight/bias prep (hoisted out of the per-call forward).

    Weights are (in, out) bf16 for the MXU; biases and the final 256->1 weight
    row stay f32.
    """
    return dict(
        w1=params["w1"].astype(jnp.bfloat16),        # (F, 512)
        b1=params["b1"].astype(jnp.float32),         # (1, 512)
        w2=params["w2"].astype(jnp.bfloat16),        # (512, 256)
        b2=params["b2"].astype(jnp.float32),         # (1, 256)
        w3=params["w3"].astype(jnp.float32).T,       # (1, 256) row
        b3=params["b3"].astype(jnp.float32),         # (1, 1)
    )


def _choose_tiling(B):
    """Pick (batch tile, number of tiles)."""
    if B <= 1024:
        return B, 1                      # exact single tile, no batch padding
    # Large batch: tiles of <= ~1024 rows, M aligned to 256 (MXU pass width on
    # v6e/v7x, multiple of 128 for v5e), even tile count so the "parallel"
    # axis can be split across both v7x TensorCores.
    num_tiles = -(-B // 1024)
    if num_tiles % 2:
        num_tiles += 1
    tb = _round_up(-(-B // num_tiles), 256)
    return tb, num_tiles


def discriminator_forward(img, prep):
    """img: (B, C, H, W) float32; prep: output of prepare_params()."""
    B = img.shape[0]
    x = img.reshape(B, -1).astype(jnp.float32)           # == img.view(B, -1)
    F = x.shape[1]
    assert prep["w1"].shape[0] == F, "feature dim mismatch with w1"

    TB, num_tiles = _choose_tiling(B)
    B_pad = TB * num_tiles
    if B_pad != B:                                       # only on multi-tile path
        x = jnp.pad(x, ((0, B_pad - B), (0, 0)))

    resident = lambda a: pl.BlockSpec(a.shape, lambda i: (0,) * a.ndim)

    flops = 2 * B_pad * (F * 512 + 512 * 256 + 256)
    bytes_accessed = (x.size * 4
                      + prep["w1"].size * 2 + prep["w2"].size * 2
                      + (prep["b1"].size + prep["b2"].size
                         + prep["w3"].size + prep["b3"].size) * 4
                      + B_pad * 4)

    # Actual VMEM footprint: double-buffered x/out tiles, (double-buffered)
    # resident weights/biases, f32 + bf16 activation temporaries, plus a small
    # Mosaic-scratch headroom.
    vmem_bytes = (2 * TB * F * 4                               # x tiles
                  + 2 * TB * 4                                 # out tiles
                  + 2 * (F * 512 + 512 * 256) * 2              # bf16 weights
                  + 2 * (512 + 256 + 256 + 1) * 4              # biases + w3 row
                  + TB * (512 + 256) * 4 + TB * (F + 512) * 2  # activations
                  + (4 << 20))                                 # headroom
    vmem_limit = int(min(vmem_bytes, 64 << 20))

    out_rows = pl.pallas_call(
        discriminator_kernel,
        out_shape=jax.ShapeDtypeStruct((num_tiles, TB), jnp.float32),
        grid=(num_tiles,),
        in_specs=[
            pl.BlockSpec((TB, F), lambda i: (i, 0)),     # x: tiled over batch
            resident(prep["w1"]), resident(prep["b1"]),
            resident(prep["w2"]), resident(prep["b2"]),
            resident(prep["w3"]), resident(prep["b3"]),
        ],
        out_specs=pl.BlockSpec((1, TB), lambda i: (i, 0)),   # lane-dense rows
        compiler_params=pltpu.CompilerParams(
            dimension_semantics=("parallel",),
            vmem_limit_bytes=vmem_limit),
        cost_estimate=pl.CostEstimate(
            flops=flops, transcendentals=0, bytes_accessed=bytes_accessed),
    )(x, prep["w1"], prep["b1"], prep["w2"], prep["b2"], prep["w3"], prep["b3"])

    return out_rows.reshape(-1)[:B].reshape(B, 1)


def init_params(key, in_features):
    """Deterministic init mirroring nn.Linear shapes; stored as (in, out) / (1, out)."""
    dims = [(in_features, 512), (512, 256), (256, 1)]
    params = {}
    for i, (fan_in, fan_out) in enumerate(dims, start=1):
        key, kw, kb = jax.random.split(key, 3)
        bound = 1.0 / jnp.sqrt(fan_in)
        params[f"w{i}"] = jax.random.uniform(
            kw, (fan_in, fan_out), jnp.float32, -bound, bound)
        params[f"b{i}"] = jax.random.uniform(
            kb, (1, fan_out), jnp.float32, -bound, bound)
    return params


if __name__ == "__main__":
    # Shapes consistent with the module: opt.img_size = 16, channels = 1, so
    # img.view(B, -1) has img_size**2 = 256 features (what the first Linear expects).
    B, C, H, W = 2, 1, 16, 16
    key = jax.random.PRNGKey(0)
    k_img, k_params = jax.random.split(key)

    img = jax.random.normal(k_img, (B, C, H, W), jnp.float32)
    params = init_params(k_params, C * H * W)
    prep = prepare_params(params)        # one-time weight prep (hoisted)

    validity = discriminator_forward(img, prep)
    jax.block_until_ready(validity)

    # Reference in plain JAX, following the same bf16-input / f32-accumulate path.
    hp = jax.lax.Precision.HIGHEST
    bf = lambda a: a.astype(jnp.bfloat16).astype(jnp.float32)
    x = img.reshape(B, -1)
    h1 = jnp.dot(bf(x), bf(params["w1"]), precision=hp) + params["b1"]
    h1 = jnp.where(h1 > 0, h1, 0.2 * h1)
    h2 = jnp.dot(bf(h1), bf(params["w2"]), precision=hp) + params["b2"]
    h2 = jnp.where(h2 > 0, h2, 0.2 * h2)
    ref = jnp.dot(h2, params["w3"], precision=hp) + params["b3"]

    assert validity.shape == (B, 1)
    assert jnp.allclose(validity, ref, atol=1e-3, rtol=1e-3), (
        f"max abs err {jnp.max(jnp.abs(validity - ref))}")

    print("KERNEL_OK")
</pallas_src>

<mosaic_0001>
module attributes {stable_mosaic.version = 11 : i64} {
  func.func @discriminator_kernel(%arg0: i32, %arg1: memref<2x256xf32, #tpu.memory_space<vmem>>, %arg2: memref<256x512xbf16, #tpu.memory_space<vmem>>, %arg3: memref<1x512xf32, #tpu.memory_space<vmem>>, %arg4: memref<512x256xbf16, #tpu.memory_space<vmem>>, %arg5: memref<1x256xf32, #tpu.memory_space<vmem>>, %arg6: memref<1x256xf32, #tpu.memory_space<vmem>>, %arg7: memref<1x1xf32, #tpu.memory_space<vmem>>, %arg8: memref<1x2xf32, #tpu.memory_space<vmem>>) attributes {dimension_semantics = [#tpu.dimension_semantics<parallel>], iteration_bounds = array<i64: 1>, scalar_prefetch = 0 : i64, scratch_operands = 0 : i64, tpu.core_type = #tpu.core_type<tc>, window_params = [{transform_indices = @transform_0, window_bounds = array<i64: 2, 256>}, {pipeline_mode = #tpu.pipeline_mode<synchronous>, transform_indices = @transform_1, window_bounds = array<i64: 256, 512>}, {pipeline_mode = #tpu.pipeline_mode<synchronous>, transform_indices = @transform_2, window_bounds = array<i64: 1, 512>}, {pipeline_mode = #tpu.pipeline_mode<synchronous>, transform_indices = @transform_3, window_bounds = array<i64: 512, 256>}, {pipeline_mode = #tpu.pipeline_mode<synchronous>, transform_indices = @transform_4, window_bounds = array<i64: 1, 256>}, {pipeline_mode = #tpu.pipeline_mode<synchronous>, transform_indices = @transform_5, window_bounds = array<i64: 1, 256>}, {pipeline_mode = #tpu.pipeline_mode<synchronous>, transform_indices = @transform_6, window_bounds = array<i64: 1, 1>}, {transform_indices = @transform_7, window_bounds = array<i64: 1, 2>}]} {
    %c0 = arith.constant 0 : index
    %c0_0 = arith.constant 0 : index
    %0 = vector.load %arg1[%c0, %c0_0] : memref<2x256xf32, #tpu.memory_space<vmem>>, vector<2x256xf32>
    %1 = arith.truncf %0 : vector<2x256xf32> to vector<2x256xbf16>
    %c0_1 = arith.constant 0 : index
    %c0_2 = arith.constant 0 : index
    %2 = vector.load %arg2[%c0_1, %c0_2] : memref<256x512xbf16, #tpu.memory_space<vmem>>, vector<256x512xbf16>
    %cst = arith.constant dense<0.000000e+00> : vector<2x512xf32>
    %3 = tpu.matmul %1, %2, %cst {dimension_numbers = #tpu.dot_dimension_numbers<[1], [0], [0], [1], [0, 0, 1, 1], [], []>} : vector<2x256xbf16>, vector<256x512xbf16>, vector<2x512xf32> -> vector<2x512xf32>
    %c0_3 = arith.constant 0 : index
    %c0_4 = arith.constant 0 : index
    %4 = vector.load %arg3[%c0_3, %c0_4] : memref<1x512xf32, #tpu.memory_space<vmem>>, vector<1x512xf32>
    %5 = vector.broadcast %4 : vector<1x512xf32> to vector<2x512xf32>
    %6 = arith.addf %3, %5 : vector<2x512xf32>
    %cst_5 = arith.constant 0.000000e+00 : f32
    %7 = vector.broadcast %cst_5 : f32 to vector<2x512xf32>
    %8 = arith.cmpf ogt, %6, %7 : vector<2x512xf32>
    %cst_6 = arith.constant 2.000000e-01 : f32
    %9 = vector.broadcast %cst_6 : f32 to vector<2x512xf32>
    %10 = arith.mulf %9, %6 : vector<2x512xf32>
    %11 = arith.select %8, %6, %10 : vector<2x512xi1>, vector<2x512xf32>
    %12 = arith.truncf %11 : vector<2x512xf32> to vector<2x512xbf16>
    %c0_7 = arith.constant 0 : index
    %c0_8 = arith.constant 0 : index
    %13 = vector.load %arg4[%c0_7, %c0_8] : memref<512x256xbf16, #tpu.memory_space<vmem>>, vector<512x256xbf16>
    %cst_9 = arith.constant dense<0.000000e+00> : vector<2x256xf32>
    %14 = tpu.matmul %12, %13, %cst_9 {dimension_numbers = #tpu.dot_dimension_numbers<[1], [0], [0], [1], [0, 0, 1, 1], [], []>} : vector<2x512xbf16>, vector<512x256xbf16>, vector<2x256xf32> -> vector<2x256xf32>
    %c0_10 = arith.constant 0 : index
    %c0_11 = arith.constant 0 : index
    %15 = vector.load %arg5[%c0_10, %c0_11] : memref<1x256xf32, #tpu.memory_space<vmem>>, vector<1x256xf32>
    %16 = vector.broadcast %15 : vector<1x256xf32> to vector<2x256xf32>
    %17 = arith.addf %14, %16 : vector<2x256xf32>
    %cst_12 = arith.constant 0.000000e+00 : f32
    %18 = vector.broadcast %cst_12 : f32 to vector<2x256xf32>
    %19 = arith.cmpf ogt, %17, %18 : vector<2x256xf32>
    %cst_13 = arith.constant 2.000000e-01 : f32
    %20 = vector.broadcast %cst_13 : f32 to vector<2x256xf32>
    %21 = arith.mulf %20, %17 : vector<2x256xf32>
    %22 = arith.select %19, %17, %21 : vector<2x256xi1>, vector<2x256xf32>
    %c0_14 = arith.constant 0 : index
    %c0_15 = arith.constant 0 : index
    %23 = vector.load %arg6[%c0_14, %c0_15] : memref<1x256xf32, #tpu.memory_space<vmem>>, vector<1x256xf32>
    %24 = vector.broadcast %23 : vector<1x256xf32> to vector<2x256xf32>
    %25 = arith.mulf %22, %24 : vector<2x256xf32>
    %cst_16 = arith.constant dense<0.000000e+00> : vector<2xf32>
    %26 = vector.multi_reduction <add>, %25, %cst_16 [1] : vector<2x256xf32> to vector<2xf32>
    %27 = vector.shape_cast %26 : vector<2xf32> to vector<1x2xf32>
    %c0_17 = arith.constant 0 : index
    %c0_18 = arith.constant 0 : index
    %28 = vector.load %arg7[%c0_17, %c0_18] : memref<1x1xf32, #tpu.memory_space<vmem>>, vector<1x1xf32>
    %29 = vector.broadcast %28 : vector<1x1xf32> to vector<1x2xf32>
    %30 = arith.addf %27, %29 : vector<1x2xf32>
    %c0_19 = arith.constant 0 : index
    %c0_20 = arith.constant 0 : index
    %31 = vector.load %arg8[%c0_19, %c0_20] : memref<1x2xf32, #tpu.memory_space<vmem>>, vector<1x2xf32>
    tpu.vector_store %arg8[%c0_19, %c0_20], %30 {strides = array<i32>} : memref<1x2xf32, #tpu.memory_space<vmem>>, vector<1x2xf32>,
    return
  }
  func.func @transform_0(%arg0: i32) -> (i32, i32) {
    %c0_i32 = arith.constant 0 : i32
    %c0_i32_0 = arith.constant 0 : i32
    return %arg0, %c0_i32 : i32, i32
  }
  func.func @transform_1(%arg0: i32) -> (i32, i32) {
    %c0_i32 = arith.constant 0 : i32
    %c0_i32_0 = arith.constant 0 : i32
    %c0_i32_1 = arith.constant 0 : i32
    return %c0_i32, %c0_i32_0 : i32, i32
  }
  func.func @transform_2(%arg0: i32) -> (i32, i32) {
    %c0_i32 = arith.constant 0 : i32
    %c0_i32_0 = arith.constant 0 : i32
    %c0_i32_1 = arith.constant 0 : i32
    return %c0_i32, %c0_i32_0 : i32, i32
  }
  func.func @transform_3(%arg0: i32) -> (i32, i32) {
    %c0_i32 = arith.constant 0 : i32
    %c0_i32_0 = arith.constant 0 : i32
    %c0_i32_1 = arith.constant 0 : i32
    return %c0_i32, %c0_i32_0 : i32, i32
  }
  func.func @transform_4(%arg0: i32) -> (i32, i32) {
    %c0_i32 = arith.constant 0 : i32
    %c0_i32_0 = arith.constant 0 : i32
    %c0_i32_1 = arith.constant 0 : i32
    return %c0_i32, %c0_i32_0 : i32, i32
  }
  func.func @transform_5(%arg0: i32) -> (i32, i32) {
    %c0_i32 = arith.constant 0 : i32
    %c0_i32_0 = arith.constant 0 : i32
    %c0_i32_1 = arith.constant 0 : i32
    return %c0_i32, %c0_i32_0 : i32, i32
  }
  func.func @transform_6(%arg0: i32) -> (i32, i32) {
    %c0_i32 = arith.constant 0 : i32
    %c0_i32_0 = arith.constant 0 : i32
    %c0_i32_1 = arith.constant 0 : i32
    return %c0_i32, %c0_i32_0 : i32, i32
  }
  func.func @transform_7(%arg0: i32) -> (i32, i32) {
    %c0_i32 = arith.constant 0 : i32
    %c0_i32_0 = arith.constant 0 : i32
    return %arg0, %c0_i32 : i32, i32
  }
}

</mosaic_0001>

<bundles_post_ra>
// kernel: tpu_custom_call.1
= control target key start
LH: loop header
LB: loop body
LE: loop exit
PB: predicated region body
PF: predicated region fallthrough
CT: control target
= control target key end

     0   :  { %s1707_s0 = inlined_call_operand.hbm [shape: f32[2,256], index: 0, kind: input, shape index: {}]   ;;  %s1708_s1 = inlined_call_operand.hbm [shape: bf16[256,512], index: 1, kind: input, shape index: {}]   ;;  %s1709_s2 = inlined_call_operand.vmem [shape: f32[1,512], index: 2, kind: input, shape index: {}]   ;;  %s1710_s3 = inlined_call_operand.hbm [shape: bf16[512,256], index: 3, kind: input, shape index: {}]   ;;  %s1711_s4 = inlined_call_operand.vmem [shape: f32[1,256], index: 4, kind: input, shape index: {}]   ;;  %s1712_s5 = inlined_call_operand.vmem [shape: f32[1,256], index: 5, kind: input, shape index: {}]   ;;  %s1713_s6 = inlined_call_operand.<no memory space> [shape: f32[1,1], index: 6, kind: input, shape index: {}]   ;;  %s1714_s7 = inlined_call_operand.hbm [shape: f32[1,2], index: 7, kind: output, shape index: {}]  }
   0x1   :  { %v12_v0 = vstv %s1713_s6 }
   0x2   :  { %13 = vst [vmem:[#allocation2] sm:$0x1] %v12_v0 }
   0x3   :  { %14 = vsyncpa [#allocation4], 0 }
   0x4   :  { %15 = vsyncpa [#allocation7], 0 }
   0x5   :  { %16 = vsyncpa [#allocation5], 0  ;;  %s1558_s26 = smov [#allocation6]   ;;  %s1464_s30 = scalar_lea.hbm %s1708_s1, 8192 }
   0x6   :  { %s32_s27 = sshll.u32 %s1558_s26, 4  ;;  %p1465_p0 = scmp.ne.s32.totalorder %s1708_s1, %s1464_s30  ;;  %s33_s27 = int_to_ptr.vmem [resolvable:$true] %s32_s27 }
   0x7   :  { %p1468_p1 = scmp.lt.u32.totalorder %s1464_s30, %s1708_s1 }
   0x9   :  { %p1470_p2 = pnand %p1468_p1, %p1465_p0 }
   0xb   :  { %1473 = shalt.err (!%p1470_p2)
}
   0xc   :  { %s1474_s6 = scalar_lea.vmem %s33_s27, 8192  ;;  %p1479_p4 = scmp.lt.s32.totalorder %s33_s27, %s33_s27 }
   0xd   :  { %p1475_p3 = scmp.ne.s32.totalorder %s33_s27, %s1474_s6  ;;  %p1480_p5 = scmp.lt.s32.totalorder %s1474_s6, %s1474_s6 }
   0xf   :  { %p1481_p6 = por %p1480_p5, %p1479_p4 }
  0x11   :  { %p1482_p7 = pnand %p1481_p6, %p1475_p3 }
  0x13   :  { %1485 = shalt.err (!%p1482_p7)
}
  0x14   :  { %s1559_s12 = smov 256   ;;  %s1560_s13 = smov 16  }
  0x15   :  { %38 = dma.hbm_to_vmem [thread:$0]  %s1708_s1, 8192, %s33_s27, [#allocation7], %s1559_s12, %s1559_s12, %s1560_s13  }
  0x16   :  { %s1561_s16 = smov [#allocation3]   ;;  %s1562_s18 = smov [#allocation8]  }
  0x17   :  { %s23_s17 = sshll.u32 %s1561_s16, 4  ;;  %s46_s19 = sshll.u32 %s1562_s18, 4  ;;  %s24_s17 = int_to_ptr.vmem [resolvable:$true] %s23_s17  ;;  %s47_s19 = int_to_ptr.vmem [resolvable:$true] %s46_s19 }
  0x18   :  { %s1486_s22 = scalar_lea.hbm %s1707_s0, 64 }
  0x19   :  { %p1487_p8 = scmp.ne.s32.totalorder %s1707_s0, %s1486_s22  ;;  %p1490_p9 = scmp.lt.u32.totalorder %s1486_s22, %s1707_s0 }
  0x1b   :  { %p1492_p10 = pnand %p1490_p9, %p1487_p8 }
  0x1d   :  { %1495 = shalt.err (!%p1492_p10)
}
  0x1e   :  { %s1496_s1 = scalar_lea.vmem %s24_s17, 64  ;;  %p1501_p12 = scmp.lt.s32.totalorder %s24_s17, %s24_s17 }
  0x1f   :  { %p1497_p11 = scmp.ne.s32.totalorder %s24_s17, %s1496_s1  ;;  %p1502_p13 = scmp.lt.s32.totalorder %s1496_s1, %s1496_s1 }
  0x21   :  { %p1503_p0 = por %p1502_p13, %p1501_p12 }
  0x23   :  { %p1504_p1 = pnand %p1503_p0, %p1497_p11 }
  0x25   :  { %1507 = shalt.err (!%p1504_p1)
}
  0x26   :  { %26 = dma.hbm_to_vmem [thread:$0]  %s1707_s0, 64, %s24_s17, [#allocation4]  }
  0x27   :  { %s1508_s8 = scalar_lea.hbm %s1710_s3, 8192 }
  0x28   :  { %p1509_p2 = scmp.ne.s32.totalorder %s1710_s3, %s1508_s8  ;;  %p1512_p3 = scmp.lt.u32.totalorder %s1508_s8, %s1710_s3 }
  0x2a   :  { %p1514_p4 = pnand %p1512_p3, %p1509_p2 }
  0x2c   :  { %1517 = shalt.err (!%p1514_p4)
}
  0x2d   :  { %s1518_s12 = scalar_lea.vmem %s47_s19, 8192  ;;  %p1523_p6 = scmp.lt.s32.totalorder %s47_s19, %s47_s19 }
  0x2e   :  { %p1519_p5 = scmp.ne.s32.totalorder %s47_s19, %s1518_s12  ;;  %p1524_p7 = scmp.lt.s32.totalorder %s1518_s12, %s1518_s12 }
  0x30   :  { %p1525_p8 = por %p1524_p7, %p1523_p6 }
  0x32   :  { %p1526_p9 = pnand %p1525_p8, %p1519_p5 }
  0x34   :  { %1529 = shalt.err (!%p1526_p9)
}
  0x35   :  { %s1563_s0 = smov 128   ;;  %s1564_s13 = smov 8  }
  0x36   :  { %52 = dma.hbm_to_vmem [thread:$0]  %s1710_s3, 8192, %s47_s19, [#allocation7], %s1563_s0, %s1563_s0, %s1564_s13  }
  0x37   :  { %1552 = dma.done.wait [#allocation4], 64  }
  0x38   :  { %1553 = vsyncadd [#allocation4], 4294967232 }
  0x39   :  { %1554 = dma.done.wait [#allocation7], 16384  }
  0x3a   :  { %1555 = vsyncadd [#allocation7], 4294950912  ;;  %v1272_v1 = vld [vmem:[#allocation6 + $0x4] ss:$16 sps:$4 sm:$0xff]   ;;  %v1274_v2 = vld [vmem:[#allocation6] ss:$16 sps:$4 sm:$0xff]  }
  0x3b   :  { %488 = vmatprep.subr.bf16.mxu1 %v1272_v1  ;;  %v1275_v3 = vld [vmem:[#allocation6 + $0x24] ss:$16 sps:$4 sm:$0xff]   ;;  %v1277_v4 = vld [vmem:[#allocation6 + $0x20] ss:$16 sps:$4 sm:$0xff]   ;;  %v1322_v46 = vld [vmem:[#allocation6 + $0xc] ss:$16 sps:$4 sm:$0xff]  }
  0x3c   :  { %489 = vmatpush1.bf16.msra.mxu1 %v1274_v2  ;;  %v1278_v5 = vld [vmem:[#allocation6 + $0x44] ss:$16 sps:$4 sm:$0xff]   ;;  %v1280_v6 = vld [vmem:[#allocation6 + $0x40] ss:$16 sps:$4 sm:$0xff]   ;;  %v1320_v48 = vld [vmem:[#allocation6 + $0x8] ss:$16 sps:$4 sm:$0xff]  }
  0x3d   :  { %490 = vmatprep.subr.bf16.mxu1 %v1275_v3  ;;  %v1281_v7 = vld [vmem:[#allocation6 + $0x64] ss:$16 sps:$4 sm:$0xff]   ;;  %v1283_v8 = vld [vmem:[#allocation6 + $0x60] ss:$16 sps:$4 sm:$0xff]   ;;  %v1325_v50 = vld [vmem:[#allocation6 + $0x2c] ss:$16 sps:$4 sm:$0xff]  }
  0x3e   :  { %v1284_v9 = vld [vmem:[#allocation6 + $0x84] ss:$16 sps:$4 sm:$0xff]   ;;  %v1286_v10 = vld [vmem:[#allocation6 + $0x80] ss:$16 sps:$4 sm:$0xff]   ;;  %v1323_v53 = vld [vmem:[#allocation6 + $0x28] ss:$16 sps:$4 sm:$0xff]  }
  0x3f   :  { %v1287_v11 = vld [vmem:[#allocation6 + $0xa4] ss:$16 sps:$4 sm:$0xff]   ;;  %v1289_v12 = vld [vmem:[#allocation6 + $0xa0] ss:$16 sps:$4 sm:$0xff]   ;;  %v1328_v54 = vld [vmem:[#allocation6 + $0x4c] ss:$16 sps:$4 sm:$0xff]  }
  0x40   :  { %491 = vmatpush1.bf16.msra.mxu1 %v1277_v4  ;;  %v1290_v13 = vld [vmem:[#allocation6 + $0xc4] ss:$16 sps:$4 sm:$0xff]   ;;  %v1646_v14 = vld.sshfl [vmem:[#allocation3] sm:$0x33 pattern:$0x76325410] }
  0x41   :  { %492 = vmatprep.subr.bf16.mxu1 %v1278_v5  ;;  %v77_v15 = vcombine.high %v1646_v14, %v1646_v14  ;;  %v1292_v16 = vld [vmem:[#allocation6 + $0xc0] ss:$16 sps:$4 sm:$0xff]   ;;  %v1293_v17 = vld [vmem:[#allocation6 + $0xe4] ss:$16 sps:$4 sm:$0xff]   ;;  %v1655_v49 = vpack.c.bf16 %v1646_v14, %v1646_v14  ;;  %v1326_v57 = vld [vmem:[#allocation6 + $0x48] ss:$16 sps:$4 sm:$0xff]  }
  0x42   :  { %v1295_v19 = vld [vmem:[#allocation6 + $0xe0] ss:$16 sps:$4 sm:$0xff]   ;;  %v1296_v20 = vld [vmem:[#allocation6 + $0x104] ss:$16 sps:$4 sm:$0xff]   ;;  %v1331_v58 = vld [vmem:[#allocation6 + $0x6c] ss:$16 sps:$4 sm:$0xff]  }
  0x43   :  { %v1650_v18 = vpack.c.bf16 %v77_v15, %v77_v15  ;;  %v1298_v21 = vld [vmem:[#allocation6 + $0x100] ss:$16 sps:$4 sm:$0xff]   ;;  %v1299_v22 = vld [vmem:[#allocation6 + $0x124] ss:$16 sps:$4 sm:$0xff]   ;;  %v1329_v61 = vld [vmem:[#allocation6 + $0x68] ss:$16 sps:$4 sm:$0xff]  }
  0x44   :  { %493 = vmatpush1.bf16.msra.mxu1 %v1280_v6  ;;  %v1301_v23 = vld [vmem:[#allocation6 + $0x120] ss:$16 sps:$4 sm:$0xff]   ;;  %v1302_v24 = vld [vmem:[#allocation6 + $0x144] ss:$16 sps:$4 sm:$0xff]   ;;  %v1334_v62 = vld [vmem:[#allocation6 + $0x8c] ss:$16 sps:$4 sm:$0xff]  }
  0x45   :  { %494 = vmatprep.subr.bf16.mxu1 %v1281_v7  ;;  %520 = vmatprep.mubr.bf16.mxu1 %v1650_v18  ;;  %v1304_v25 = vld [vmem:[#allocation6 + $0x140] ss:$16 sps:$4 sm:$0xff]   ;;  %v1305_v26 = vld [vmem:[#allocation6 + $0x164] ss:$16 sps:$4 sm:$0xff]   ;;  %v1332_v1 = vld [vmem:[#allocation6 + $0x88] ss:$16 sps:$4 sm:$0xff]  }
  0x46   :  { %v1307_v27 = vld [vmem:[#allocation6 + $0x160] ss:$16 sps:$4 sm:$0xff]   ;;  %v1308_v28 = vld [vmem:[#allocation6 + $0x184] ss:$16 sps:$4 sm:$0xff]   ;;  %v1337_v2 = vld [vmem:[#allocation6 + $0xac] ss:$16 sps:$4 sm:$0xff]  }
  0x47   :  { %v1368_v29 = vld [vmem:[#allocation8 + $0x4] ss:$8 sps:$4 sm:$0xff]   ;;  %v1370_v30 = vld [vmem:[#allocation8] ss:$8 sps:$4 sm:$0xff]   ;;  %v1371_v31 = vld [vmem:[#allocation8 + $0x14] ss:$8 sps:$4 sm:$0xff]  }
  0x48   :  { %495 = vmatpush1.bf16.msra.mxu1 %v1283_v8  ;;  %v1310_v32 = vld [vmem:[#allocation6 + $0x180] ss:$16 sps:$4 sm:$0xff]   ;;  %982 = vmatprep.subr.bf16.mxu0 %v1368_v29  ;;  %v1311_v34 = vld [vmem:[#allocation6 + $0x1a4] ss:$16 sps:$4 sm:$0xff]   ;;  %v1335_v5 = vld [vmem:[#allocation6 + $0xa8] ss:$16 sps:$4 sm:$0xff]  }
  0x49   :  { %496 = vmatprep.subr.bf16.mxu1 %v1284_v9  ;;  %983 = vmatpush1.bf16.msra.mxu0 %v1370_v30  ;;  %v1373_v33 = vld [vmem:[#allocation8 + $0x10] ss:$8 sps:$4 sm:$0xff]   ;;  %v1374_v35 = vld [vmem:[#allocation8 + $0x24] ss:$8 sps:$4 sm:$0xff]   ;;  %v1376_v37 = vld [vmem:[#allocation8 + $0x20] ss:$8 sps:$4 sm:$0xff]  }
  0x4a   :  { %984 = vmatprep.subr.bf16.mxu0 %v1371_v31  ;;  %v1313_v36 = vld [vmem:[#allocation6 + $0x1a0] ss:$16 sps:$4 sm:$0xff]   ;;  %v1314_v38 = vld [vmem:[#allocation6 + $0x1c4] ss:$16 sps:$4 sm:$0xff]   ;;  %v1340_v6 = vld [vmem:[#allocation6 + $0xcc] ss:$16 sps:$4 sm:$0xff]  }
  0x4b   :  { %v1377_v39 = vld [vmem:[#allocation8 + $0x34] ss:$8 sps:$4 sm:$0xff]   ;;  %v1316_v40 = vld [vmem:[#allocation6 + $0x1c0] ss:$16 sps:$4 sm:$0xff]   ;;  %v1380_v43 = vld [vmem:[#allocation8 + $0x44] ss:$8 sps:$4 sm:$0xff]  }
  0x4c   :  { %497 = vmatpush1.bf16.msra.mxu1 %v1286_v10  ;;  %v1379_v41 = vld [vmem:[#allocation8 + $0x30] ss:$8 sps:$4 sm:$0xff]   ;;  %v1317_v42 = vld [vmem:[#allocation6 + $0x1e4] ss:$16 sps:$4 sm:$0xff]   ;;  %v1382_v45 = vld [vmem:[#allocation8 + $0x40] ss:$8 sps:$4 sm:$0xff]  }
  0x4d   :  { %498 = vmatprep.subr.bf16.mxu1 %v1287_v11  ;;  %985 = vmatpush1.bf16.msra.mxu0 %v1373_v33  ;;  %v1319_v44 = vld [vmem:[#allocation6 + $0x1e0] ss:$16 sps:$4 sm:$0xff]   ;;  %v1383_v47 = vld [vmem:[#allocation8 + $0x54] ss:$8 sps:$4 sm:$0xff]   ;;  %v1386_v52 = vld [vmem:[#allocation8 + $0x64] ss:$8 sps:$4 sm:$0xff]  }
  0x4e   :  { %986 = vmatprep.subr.bf16.mxu0 %v1374_v35  ;;  %v1385_v51 = vld [vmem:[#allocation8 + $0x50] ss:$8 sps:$4 sm:$0xff]   ;;  %v1388_v55 = vld [vmem:[#allocation8 + $0x60] ss:$8 sps:$4 sm:$0xff]   ;;  %v1389_v56 = vld [vmem:[#allocation8 + $0x74] ss:$8 sps:$4 sm:$0xff]  }
  0x4f   :  { %v1391_v59 = vld [vmem:[#allocation8 + $0x70] ss:$8 sps:$4 sm:$0xff]   ;;  %v1392_v60 = vld [vmem:[#allocation8 + $0x84] ss:$8 sps:$4 sm:$0xff]   ;;  %v1394_v63 = vld [vmem:[#allocation8 + $0x80] ss:$8 sps:$4 sm:$0xff]  }
  0x50   :  { %499 = vmatpush1.bf16.msra.mxu1 %v1289_v12  ;;  %v1395_v0 = vld [vmem:[#allocation8 + $0x94] ss:$8 sps:$4 sm:$0xff]   ;;  %v1397_v3 = vld [vmem:[#allocation8 + $0x90] ss:$8 sps:$4 sm:$0xff]   ;;  %v1398_v4 = vld [vmem:[#allocation8 + $0xa4] ss:$8 sps:$4 sm:$0xff]  }
  0x51   :  { %500 = vmatprep.subr.bf16.mxu1 %v1290_v13  ;;  %987 = vmatpush1.bf16.msra.mxu0 %v1376_v37  ;;  %v1400_v7 = vld [vmem:[#allocation8 + $0xa0] ss:$8 sps:$4 sm:$0xff]   ;;  %v1401_v8 = vld [vmem:[#allocation8 + $0xb4] ss:$8 sps:$4 sm:$0xff]   ;;  %v1403_v11 = vld [vmem:[#allocation8 + $0xb0] ss:$8 sps:$4 sm:$0xff]  }
  0x52   :  { %988 = vmatprep.subr.bf16.mxu0 %v1377_v39  ;;  %v1338_v9 = vld [vmem:[#allocation6 + $0xc8] ss:$16 sps:$4 sm:$0xff]   ;;  %v1343_v10 = vld [vmem:[#allocation6 + $0xec] ss:$16 sps:$4 sm:$0xff]   ;;  %vm1084_vm6 = vcmask 1041408   ;;  %vm1109_vm7 = vcmask 8192  }
  0x53   :  { %v1404_v12 = vld [vmem:[#allocation8 + $0xc4] ss:$8 sps:$4 sm:$0xff]   ;;  %v1341_v13 = vld [vmem:[#allocation6 + $0xe8] ss:$16 sps:$4 sm:$0xff]   ;;  %v1413_v35 = vld [vmem:[#allocation8 + $0xf4] ss:$8 sps:$4 sm:$0xff]  }
  0x54   :  { %501 = vmatpush1.bf16.msra.mxu1 %v1292_v16  ;;  %v1346_v14 = vld [vmem:[#allocation6 + $0x10c] ss:$16 sps:$4 sm:$0xff]   ;;  %v1406_v15 = vld [vmem:[#allocation8 + $0xc0] ss:$8 sps:$4 sm:$0xff]  }
  0x55   :  { %502 = vmatprep.subr.bf16.mxu1 %v1293_v17  ;;  %989 = vmatpush1.bf16.msra.mxu0 %v1379_v41  ;;  %v1407_v16 = vld [vmem:[#allocation8 + $0xd4] ss:$8 sps:$4 sm:$0xff]   ;;  %v1344_v17 = vld [vmem:[#allocation6 + $0x108] ss:$16 sps:$4 sm:$0xff]   ;;  %v1410_v33 = vld [vmem:[#allocation8 + $0xe4] ss:$8 sps:$4 sm:$0xff]  }
  0x56   :  { %990 = vmatprep.subr.bf16.mxu0 %v1380_v43  ;;  %v1364_v29 = vld [vmem:[#allocation6 + $0x1cc] ss:$16 sps:$4 sm:$0xff]   ;;  %v1362_v30 = vld [vmem:[#allocation6 + $0x1c8] ss:$16 sps:$4 sm:$0xff]  }
  0x57   :  { %v1367_v31 = vld [vmem:[#allocation6 + $0x1ec] ss:$16 sps:$4 sm:$0xff]  }
  0x58   :  { %503 = vmatpush1.bf16.msra.mxu1 %v1295_v19  ;;  %v1409_v19 = vld [vmem:[#allocation8 + $0xd0] ss:$8 sps:$4 sm:$0xff]   ;;  %v1418_v37 = vld [vmem:[#allocation8 + $0x104] ss:$8 sps:$4 sm:$0xff]  }
  0x59   :  { %504 = vmatprep.subr.bf16.mxu1 %v1296_v20  ;;  %991 = vmatpush1.bf16.msra.mxu0 %v1382_v45  ;;  %v1347_v20 = vld [vmem:[#allocation6 + $0x128] ss:$16 sps:$4 sm:$0xff]  }
  0x5a   :  { %992 = vmatprep.subr.bf16.mxu0 %v1383_v47  ;;  %v1669_v41 = vld [vmem:[%s1709_s2] sm:$0xf] }
  0x5c   :  { %505 = vmatpush1.bf16.msra.mxu1 %v1298_v21  ;;  %v1352_v21 = vld [vmem:[#allocation6 + $0x14c] ss:$16 sps:$4 sm:$0xff]  }
  0x5d   :  { %506 = vmatprep.subr.bf16.mxu1 %v1299_v22  ;;  %993 = vmatpush1.bf16.msra.mxu0 %v1385_v51  ;;  %v1350_v22 = vld [vmem:[#allocation6 + $0x148] ss:$16 sps:$4 sm:$0xff]  }
  0x5e   :  { %994 = vmatprep.subr.bf16.mxu0 %v1386_v52 }
  0x60   :  { %507 = vmatpush1.bf16.msra.mxu1 %v1301_v23  ;;  %v1355_v23 = vld [vmem:[#allocation6 + $0x16c] ss:$16 sps:$4 sm:$0xff]  }
  0x61   :  { %508 = vmatprep.subr.bf16.mxu1 %v1302_v24  ;;  %995 = vmatpush1.bf16.msra.mxu0 %v1388_v55  ;;  %v1353_v24 = vld [vmem:[#allocation6 + $0x168] ss:$16 sps:$4 sm:$0xff]  }
  0x62   :  { %996 = vmatprep.subr.bf16.mxu0 %v1389_v56  ;;  %v1416_v56 = vld [vmem:[#allocation8 + $0x100] ss:$8 sps:$4 sm:$0xff]  }
  0x64   :  { %509 = vmatpush1.bf16.msra.mxu1 %v1304_v25  ;;  %v1358_v25 = vld [vmem:[#allocation6 + $0x18c] ss:$16 sps:$4 sm:$0xff]  }
  0x65   :  { %510 = vmatprep.subr.bf16.mxu1 %v1305_v26  ;;  %997 = vmatpush1.bf16.msra.mxu0 %v1391_v59  ;;  %v1356_v26 = vld [vmem:[#allocation6 + $0x188] ss:$16 sps:$4 sm:$0xff]  }
  0x66   :  { %998 = vmatprep.subr.bf16.mxu0 %v1392_v60  ;;  %v1419_v59 = vld [vmem:[#allocation8 + $0x110] ss:$8 sps:$4 sm:$0xff]   ;;  %v1424_v60 = vld [vmem:[#allocation8 + $0x124] ss:$8 sps:$4 sm:$0xff]  }
  0x68   :  { %511 = vmatpush1.bf16.msra.mxu1 %v1307_v27  ;;  %v1361_v27 = vld [vmem:[#allocation6 + $0x1ac] ss:$16 sps:$4 sm:$0xff]  }
  0x69   :  { %512 = vmatprep.subr.bf16.mxu1 %v1308_v28  ;;  %999 = vmatpush1.bf16.msra.mxu0 %v1394_v63  ;;  %v1359_v28 = vld [vmem:[#allocation6 + $0x1a8] ss:$16 sps:$4 sm:$0xff]  }
  0x6a   :  { %1000 = vmatprep.subr.bf16.mxu0 %v1395_v0  ;;  %v1425_v63 = vld [vmem:[#allocation8 + $0x130] ss:$8 sps:$4 sm:$0xff]   ;;  %v1430_v0 = vld [vmem:[#allocation8 + $0x144] ss:$8 sps:$4 sm:$0xff]  }
  0x6c   :  { %513 = vmatpush1.bf16.msra.mxu1 %v1310_v32  ;;  %v1365_v32 = vld [vmem:[#allocation6 + $0x1e8] ss:$16 sps:$4 sm:$0xff]  }
  0x6d   :  { %514 = vmatprep.subr.bf16.mxu1 %v1311_v34  ;;  %1001 = vmatpush1.bf16.msra.mxu0 %v1397_v3  ;;  %v1412_v34 = vld [vmem:[#allocation8 + $0xe0] ss:$8 sps:$4 sm:$0xff]   ;;  %v1431_v3 = vld [vmem:[#allocation8 + $0x150] ss:$8 sps:$4 sm:$0xff]  }
  0x6e   :  { %1002 = vmatprep.subr.bf16.mxu0 %v1398_v4  ;;  %v1436_v4 = vld [vmem:[#allocation8 + $0x164] ss:$8 sps:$4 sm:$0xff]  }
  0x70   :  { %515 = vmatpush1.bf16.msra.mxu1 %v1313_v36  ;;  %v1415_v36 = vld [vmem:[#allocation8 + $0xf0] ss:$8 sps:$4 sm:$0xff]  }
  0x71   :  { %516 = vmatprep.subr.bf16.mxu1 %v1314_v38  ;;  %1003 = vmatpush1.bf16.msra.mxu0 %v1400_v7  ;;  %v148_v38 = vlaneseq  ;;  %v1437_v7 = vld [vmem:[#allocation8 + $0x170] ss:$8 sps:$4 sm:$0xff]  }
  0x72   :  { %1004 = vmatprep.subr.bf16.mxu0 %v1401_v8  ;;  %v1442_v8 = vld [vmem:[#allocation8 + $0x184] ss:$8 sps:$4 sm:$0xff]  }
  0x73   :  { %v1661_v39 = vshrl.u32 %v148_v38, 7 }
  0x74   :  { %517 = vmatpush1.bf16.msra.mxu1 %v1316_v40 }
  0x75   :  { %518 = vmatprep.subr.bf16.mxu1 %v1317_v42  ;;  %1005 = vmatpush1.bf16.msra.mxu0 %v1403_v11  ;;  %v1664_v40 = vsub.s32 0, %v1661_v39  ;;  %v1672_v42 = vsub.s32 1, %v1661_v39  ;;  %v1443_v11 = vld [vmem:[#allocation8 + $0x190] ss:$8 sps:$4 sm:$0xff]  }
  0x76   :  { %1006 = vmatprep.subr.bf16.mxu0 %v1404_v12  ;;  %v1448_v12 = vld [vmem:[#allocation8 + $0x1a4] ss:$8 sps:$4 sm:$0xff]  }
  0x77   :  { %v151_v43 = vrot.slane %v1669_v41, %v1664_v40 }
  0x78   :  { %519 = vmatpush1.bf16.msra.mxu1 %v1319_v44  ;;  %v155_v44 = vrot.slane %v1669_v41, %v1672_v42 }
  0x79   :  { %529 = vmatprep.subr.bf16.mxu1 %v1322_v46  ;;  %1007 = vmatpush1.bf16.msra.mxu0 %v1406_v15  ;;  %v1449_v15 = vld [vmem:[#allocation8 + $0x1b0] ss:$8 sps:$4 sm:$0xff]  }
  0x7a   :  { %1008 = vmatprep.subr.bf16.mxu0 %v1407_v16  ;;  %v1454_v16 = vld [vmem:[#allocation8 + $0x1c4] ss:$8 sps:$4 sm:$0xff]  }
  0x7b   :  { %521 = vmatmul.mubr.bf16.vlgmr.msra.gmra.mrb[0].mxu1 %v1655_v49 }
  0x7c   :  { %530 = vmatpush1.bf16.msra.mxu1 %v1320_v48  ;;  %561 = vmatprep.mubr.bf16.mxu1 %v1650_v18  ;;  %v1349_v18 = vld [vmem:[#allocation6 + $0x12c] ss:$16 sps:$4 sm:$0xff]  }
  0x7d   :  { %531 = vmatprep.subr.bf16.mxu1 %v1325_v50  ;;  %1009 = vmatpush1.bf16.msra.mxu0 %v1409_v19  ;;  %v158_v19 = vsub.s32 2, %v1661_v39 }
  0x7e   :  { %1010 = vmatprep.subr.bf16.mxu0 %v1410_v33 }
  0x80   :  { %532 = vmatpush1.bf16.msra.mxu1 %v1323_v53 }
  0x81   :  { %533 = vmatprep.subr.bf16.mxu1 %v1328_v54  ;;  %1011 = vmatpush1.bf16.msra.mxu0 %v1412_v34  ;;  %v1461_v34 = vld [vmem:[#allocation8 + $0x1f0] ss:$8 sps:$4 sm:$0xff]  }
  0x82   :  { %1012 = vmatprep.subr.bf16.mxu0 %v1413_v35 }
  0x84   :  { %534 = vmatpush1.bf16.msra.mxu1 %v1326_v57 }
  0x85   :  { %535 = vmatprep.subr.bf16.mxu1 %v1331_v58  ;;  %1013 = vmatpush1.bf16.msra.mxu0 %v1415_v36  ;;  %v1421_v58 = vld [vmem:[#allocation8 + $0x114] ss:$8 sps:$4 sm:$0xff]  }
  0x86   :  { %1023 = vmatprep.subr.bf16.mxu0 %v1418_v37 }
  0x88   :  { %536 = vmatpush1.bf16.msra.mxu1 %v1329_v61  ;;  %v1422_v61 = vld [vmem:[#allocation8 + $0x120] ss:$8 sps:$4 sm:$0xff]  }
  0x89   :  { %537 = vmatprep.subr.bf16.mxu1 %v1334_v62  ;;  %v1427_v62 = vld [vmem:[#allocation8 + $0x134] ss:$8 sps:$4 sm:$0xff]  }
  0x8c   :  { %538 = vmatpush1.bf16.msra.mxu1 %v1332_v1  ;;  %v1428_v1 = vld [vmem:[#allocation8 + $0x140] ss:$8 sps:$4 sm:$0xff]  }
  0x8d   :  { %539 = vmatprep.subr.bf16.mxu1 %v1337_v2  ;;  %v1433_v2 = vld [vmem:[#allocation8 + $0x154] ss:$8 sps:$4 sm:$0xff]  }
  0x90   :  { %540 = vmatpush1.bf16.msra.mxu1 %v1335_v5  ;;  %v1434_v5 = vld [vmem:[#allocation8 + $0x160] ss:$8 sps:$4 sm:$0xff]  }
  0x91   :  { %541 = vmatprep.subr.bf16.mxu1 %v1340_v6  ;;  %v1439_v6 = vld [vmem:[#allocation8 + $0x174] ss:$8 sps:$4 sm:$0xff]  }
  0x94   :  { %542 = vmatpush1.bf16.msra.mxu1 %v1338_v9  ;;  %v1440_v9 = vld [vmem:[#allocation8 + $0x180] ss:$8 sps:$4 sm:$0xff]  }
  0x95   :  { %543 = vmatprep.subr.bf16.mxu1 %v1343_v10  ;;  %v1445_v10 = vld [vmem:[#allocation8 + $0x194] ss:$8 sps:$4 sm:$0xff]  }
  0x98   :  { %544 = vmatpush1.bf16.msra.mxu1 %v1341_v13  ;;  %v1446_v13 = vld [vmem:[#allocation8 + $0x1a0] ss:$8 sps:$4 sm:$0xff]  }
  0x99   :  { %545 = vmatprep.subr.bf16.mxu1 %v1346_v14  ;;  %v1451_v14 = vld [vmem:[#allocation8 + $0x1b4] ss:$8 sps:$4 sm:$0xff]  }
  0x9c   :  { %546 = vmatpush1.bf16.msra.mxu1 %v1344_v17  ;;  %v1452_v17 = vld [vmem:[#allocation8 + $0x1c0] ss:$8 sps:$4 sm:$0xff]  }
  0x9d   :  { %547 = vmatprep.subr.bf16.mxu1 %v1349_v18  ;;  %v1457_v18 = vld [vmem:[#allocation8 + $0x1d4] ss:$8 sps:$4 sm:$0xff]  }
  0xa0   :  { %548 = vmatpush1.bf16.msra.mxu1 %v1347_v20  ;;  %v162_v20 = vsub.s32 3, %v1661_v39 }
  0xa1   :  { %549 = vmatprep.subr.bf16.mxu1 %v1352_v21  ;;  %v1455_v21 = vld [vmem:[#allocation8 + $0x1d0] ss:$8 sps:$4 sm:$0xff]  }
  0xa4   :  { %550 = vmatpush1.bf16.msra.mxu1 %v1350_v22  ;;  %v1460_v22 = vld [vmem:[#allocation8 + $0x1e4] ss:$8 sps:$4 sm:$0xff]  }
  0xa5   :  { %551 = vmatprep.subr.bf16.mxu1 %v1355_v23  ;;  %v159_v23 = vrot.slane %v1669_v41, %v158_v19 }
  0xa8   :  { %552 = vmatpush1.bf16.msra.mxu1 %v1353_v24  ;;  %v163_v24 = vrot.slane %v1669_v41, %v162_v20 }
  0xa9   :  { %553 = vmatprep.subr.bf16.mxu1 %v1358_v25  ;;  %v1458_v25 = vld [vmem:[#allocation8 + $0x1e0] ss:$8 sps:$4 sm:$0xff]  }
  0xac   :  { %554 = vmatpush1.bf16.msra.mxu1 %v1356_v26 }
  0xad   :  { %555 = vmatprep.subr.bf16.mxu1 %v1361_v27  ;;  %v1463_v27 = vld [vmem:[#allocation8 + $0x1f4] ss:$8 sps:$4 sm:$0xff]  }
  0xb0   :  { %556 = vmatpush1.bf16.msra.mxu1 %v1359_v28 }
  0xb1   :  { %557 = vmatprep.subr.bf16.mxu1 %v1364_v29 }
  0xb4   :  { %558 = vmatpush1.bf16.msra.mxu1 %v1362_v30 }
  0xb5   :  { %559 = vmatprep.subr.bf16.mxu1 %v1367_v31 }
  0xb8   :  { %560 = vmatpush1.bf16.msra.mxu1 %v1365_v32 }
  0xbb   :  { %562 = vmatmul.mubr.bf16.vlgmr.msra.gmra.mrb[4].mxu1 %v1655_v49 }
 0x14e   :  { %v522_v45 = vpop.f32.mrb[0].mxu1 }
 0x14f   :  { %v523_v46 = vadd.f32 %v522_v45, %v151_v43  ;;  %v524_v47 = vpop.f32.mrb[1].mxu1  ;;  %v650_v45 = vld [vmem:[%s1711_s4] sm:$0x3]  ;;  %s1566_s4 = smov [#allocation9]  }
 0x150   :  { %v525_v48 = vadd.f32 %v524_v47, %v155_v44  ;;  %v526_v49 = vpop.f32.mrb[2].mxu1  ;;  %v1565_v44 = vmov 0   ;;  %v659_v47 = vrot.slane %v650_v45, %v1672_v42 }
 0x151   :  { %vm570_vm0 = vcmp.gt.f32.partialorder %v523_v46, 0.0  ;;  %v574_v50 = vmul.f32 0.2, %v523_v46  ;;  %v527_v51 = vpop.f32.mrb[3].mxu1  ;;  %1271 = vset.pattern.permute.xlu0 %v1565_v44 }
 0x152   :  { %vm571_vm1 = vcmp.gt.f32.partialorder %v525_v48, 0.0  ;;  %v575_v52 = vmul.f32 0.2, %v525_v48 }
 0x153   :  { %v578_v53 = vsel %vm570_vm0, %v523_v46, %v574_v50  ;;  %v655_v46 = vrot.slane %v650_v45, %v1664_v40 }
 0x154   :  { %v579_v54 = vsel %vm571_vm1, %v525_v48, %v575_v52  ;;  %v582_v57 = vpack.c.bf16 %v578_v53, %v578_v53  ;;  %v1070_v48 = vld [vmem:[%s1712_s5] sm:$0x3]  ;;  %s1117_s5 = sshll.u32 %s1566_s4, 4  ;;  %s1118_s5 = int_to_ptr.vmem [resolvable:$true] %s1117_s5 }
 0x155   :  { %v583_v55 = vpack.c.bf16 %v579_v54, %v579_v54  ;;  %v1075_v54 = vrot.slane %v1070_v48, %v1664_v40  ;;  %s1530_s20 = scalar_lea.vmem %s1118_s5, 16  ;;  %s1534_s21 = scalar_lea.vmem %s1118_s5, 32 }
 0x156   :  { %p1531_p10 = scmp.ne.s32.totalorder %s1118_s5, %s1530_s20  ;;  %p1535_p11 = scmp.lt.s32.totalorder %s1118_s5, %s1118_s5 }
 0x157   :  { %1014 = vmatprep.mubr.bf16.mxu0 %v583_v55  ;;  %p1536_p12 = scmp.lt.s32.totalorder %s1534_s21, %s1530_s20 }
 0x158   :  { %1015 = vmatmul.mubr.bf16.vlgmr.msra.gmra.mrb[0].mxu0 %v582_v57  ;;  %v1079_v57 = vrot.slane %v1070_v48, %v1672_v42 }
 0x159   :  { %1024 = vmatpush1.bf16.msra.mxu0 %v1416_v56  ;;  %p1537_p13 = por %p1536_p12, %p1535_p11 }
 0x15a   :  { %1025 = vmatprep.subr.bf16.mxu0 %v1421_v58 }
 0x15b   :  { %p1538_p0 = pnand %p1537_p13, %p1531_p10 }
 0x15d   :  { %1026 = vmatpush1.bf16.msra.mxu0 %v1419_v59 }
 0x15e   :  { %1027 = vmatprep.subr.bf16.mxu0 %v1424_v60 }
 0x161   :  { %1028 = vmatpush1.bf16.msra.mxu0 %v1422_v61 }
 0x162   :  { %1029 = vmatprep.subr.bf16.mxu0 %v1427_v62 }
 0x165   :  { %1030 = vmatpush1.bf16.msra.mxu0 %v1425_v63 }
 0x166   :  { %1031 = vmatprep.subr.bf16.mxu0 %v1430_v0 }
 0x169   :  { %1032 = vmatpush1.bf16.msra.mxu0 %v1428_v1 }
 0x16a   :  { %1033 = vmatprep.subr.bf16.mxu0 %v1433_v2  ;;  %v1090_v2 = vld [vmem:[#allocation2] sm:$0x1] }
 0x16d   :  { %1034 = vmatpush1.bf16.msra.mxu0 %v1431_v3 }
 0x16e   :  { %1035 = vmatprep.subr.bf16.mxu0 %v1436_v4  ;;  %v1103_v4 = vand.u32 127, %v148_v38 }
 0x171   :  { %1036 = vmatpush1.bf16.msra.mxu0 %v1434_v5 }
 0x172   :  { %1037 = vmatprep.subr.bf16.mxu0 %v1439_v6  ;;  %v1106_v6 = vsub.s32 %v1103_v4, %v1661_v39 }
 0x175   :  { %1038 = vmatpush1.bf16.msra.mxu0 %v1437_v7 }
 0x176   :  { %1039 = vmatprep.subr.bf16.mxu0 %v1442_v8 }
 0x179   :  { %1040 = vmatpush1.bf16.msra.mxu0 %v1440_v9 }
 0x17a   :  { %1041 = vmatprep.subr.bf16.mxu0 %v1445_v10 }
 0x17d   :  { %1042 = vmatpush1.bf16.msra.mxu0 %v1443_v11 }
 0x17e   :  { %1043 = vmatprep.subr.bf16.mxu0 %v1448_v12 }
 0x181   :  { %1044 = vmatpush1.bf16.msra.mxu0 %v1446_v13 }
 0x182   :  { %1045 = vmatprep.subr.bf16.mxu0 %v1451_v14 }
 0x185   :  { %1046 = vmatpush1.bf16.msra.mxu0 %v1449_v15 }
 0x186   :  { %1047 = vmatprep.subr.bf16.mxu0 %v1454_v16 }
 0x189   :  { %1048 = vmatpush1.bf16.msra.mxu0 %v1452_v17 }
 0x18a   :  { %1049 = vmatprep.subr.bf16.mxu0 %v1457_v18 }
 0x18d   :  { %1050 = vmatpush1.bf16.msra.mxu0 %v1455_v21 }
 0x18e   :  { %v563_v26 = vpop.f32.mrb[4].mxu1  ;;  %1051 = vmatprep.subr.bf16.mxu0 %v1460_v22 }
 0x18f   :  { %v564_v28 = vadd.f32 %v563_v26, %v159_v23  ;;  %v565_v29 = vpop.f32.mrb[5].mxu1 }
 0x190   :  { %v566_v30 = vadd.f32 %v565_v29, %v163_v24  ;;  %v567_v31 = vpop.f32.mrb[6].mxu1 }
 0x191   :  { %vm572_vm2 = vcmp.gt.f32.partialorder %v564_v28, 0.0  ;;  %v576_v32 = vmul.f32 0.2, %v564_v28  ;;  %v568_v33 = vpop.f32.mrb[7].mxu1  ;;  %1052 = vmatpush1.bf16.msra.mxu0 %v1458_v25 }
 0x192   :  { %vm573_vm3 = vcmp.gt.f32.partialorder %v566_v30, 0.0  ;;  %v577_v35 = vmul.f32 0.2, %v566_v30  ;;  %1053 = vmatprep.subr.bf16.mxu0 %v1463_v27 }
 0x193   :  { %v580_v36 = vsel %vm572_vm2, %v564_v28, %v576_v32 }
 0x194   :  { %v581_v37 = vsel %vm573_vm3, %v566_v30, %v577_v35  ;;  %v584_v43 = vpack.c.bf16 %v580_v36, %v580_v36 }
 0x195   :  { %1054 = vmatpush1.bf16.msra.mxu0 %v1461_v34  ;;  %v585_v41 = vpack.c.bf16 %v581_v37, %v581_v37 }
 0x197   :  { %1055 = vmatprep.mubr.bf16.mxu0 %v585_v41 }
 0x198   :  { %1056 = vmatmul.mubr.bf16.vlgmr.msra.gmra.mrb[0].mxu0 %v584_v43 }
 0x26b   :  { %v1057_v49 = vpop.f32.mrb[0].mxu0 }
 0x26c   :  { %v1256_v50 = vadd.f32 %v1057_v49, %v655_v46  ;;  %v1059_v51 = vpop.f32.mrb[1].mxu0 }
 0x26d   :  { %v1257_v52 = vadd.f32 %v1059_v51, %v659_v47  ;;  %v1061_v53 = vpop.f32.mrb[2].mxu0 }
 0x26e   :  { %vm1064_vm4 = vcmp.gt.f32.partialorder %v1256_v50, 0.0  ;;  %v1066_v55 = vmul.f32 0.2, %v1256_v50  ;;  %v1062_v56 = vpop.f32.mrb[3].mxu0 }
 0x26f   :  { %vm1065_vm5 = vcmp.gt.f32.partialorder %v1257_v52, 0.0  ;;  %v1067_v58 = vmul.f32 0.2, %v1257_v52 }
 0x270   :  { %v1068_v59 = vsel %vm1064_vm4, %v1256_v50, %v1066_v55 }
 0x271   :  { %v1069_v60 = vsel %vm1065_vm5, %v1257_v52, %v1067_v58  ;;  %v1082_v61 = vmul.f32 %v1075_v54, %v1068_v59 }
 0x272   :  { %v1083_v62 = vmul.f32 %v1079_v57, %v1069_v60 }
 0x273   :  { %v1085_v63 = vsel %vm1084_vm6, %v1082_v61, 0.0 }
 0x274   :  { %v1086_v0 = vsel %vm1084_vm6, %v1083_v62, 0.0 }
 0x275   :  { %v1087_v1 = vadd.f32 %v1086_v0, %v1085_v63 }
 0x277   :  { %1088 = vadd.xlane.f32.xlu0 %v1087_v1 }
 0x28d   :  { %1093 = vperm.xlu0 %1271, %v1090_v2  }
 0x304   :  { %v1089_v3 = vpop.xlane.xlu0 %1088 }
 0x30c   :  { %v1094_v5 = vpop.permute.xlu0 %1093 }
 0x30d   :  { %v1099_v42 = vrot.slane %v1094_v5, %v1664_v40 }
 0x30f   :  { %v1100_v7 = vadd.f32 %v1099_v42, %v1089_v3 }
 0x311   :  { %v1107_v8 = vrot.slane %v1100_v7, %v1106_v6 }
 0x313   :  { %1110 = vst.msk [vmem:[#allocation9] sm:$0x1] %vm1109_vm7, %v1107_v8 }
 0x314   :  { %1541 = shalt.err (!%p1538_p0)
}
 0x315   :  { %s1542_s24 = scalar_lea.hbm %s1714_s7, 16 }
 0x316   :  { %p1543_p1 = scmp.ne.s32.totalorder %s1714_s7, %s1542_s24  ;;  %p1546_p2 = scmp.lt.u32.totalorder %s1542_s24, %s1714_s7 }
 0x318   :  { %p1548_p3 = pnand %p1546_p2, %p1543_p1 }
 0x31a   :  { %1551 = shalt.err (!%p1548_p3)
}
 0x31b   :  { %1120 = dma.vmem_to_hbm [thread:$0]  %s1118_s5, 16, %s1714_s7, [#allocation5]  }
 0x31c   :  { %1556 = dma.done.wait [#allocation5], 16  }
 0x31d   :  { %1557 = vsyncadd [#allocation5], 4294967280 }
 0x31e   :  { %1124 = vsyncpa [#allocation4], 1 }
 0x31f   :  { %1125 = vsyncpa [#allocation7], 1 }
 0x320   :  { %1126 = vsyncpa [#allocation5], 1 }

</bundles_post_ra>
